<compile_context>
chip_gen: v5e
topology: v5e:2x2
jax: 0.10.0
libtpu: 0.0.40
codegen_flags: <defaults>
</compile_context>

<pallas_src>
import jax
import jax.numpy as jnp
from jax.experimental import pallas as pl
from jax.experimental.pallas import tpu as pltpu


def harmonic_kernel(x_ref, p_ref, o_ref):
    # x_ref: (TILE_N, K)  examples on sublanes, features on lanes
    # p_ref: (2, K)       row 0 = k/2 (half spring constant), row 1 = mean
    # o_ref: (TILE_N, 1)  per-example energy
    p = p_ref[...]                       # tiny, resident across the grid
    k_half = p[0:1, :]                   # (1, K)
    mean = p[1:2, :]                     # (1, K)

    x = x_ref[...].astype(jnp.float32)   # (TILE_N, K), accumulate in f32
    d = x - mean
    # reduce over the feature (lane) axis -> (TILE_N, 1) energies
    o_ref[...] = jnp.sum(k_half * d * d, axis=1, keepdims=True).astype(o_ref.dtype)


def harmonic_layer_forward(in_feat, harmonic_parameters, tile_n=None):
    """in_feat: (N, K), harmonic_parameters: (2, K) -> energy: (N, 1) f32."""
    N, K = in_feat.shape
    assert harmonic_parameters.shape == (2, K)
    itemsize = jnp.dtype(in_feat.dtype).itemsize

    # Precompute k/2 = p0^2/2 and mean = p1^2 in the wrapper.  Params are tiny
    # (2*K elements), so this is free and removes per-grid-step VPU work.
    p = harmonic_parameters.astype(jnp.float32)
    params = jnp.stack([0.5 * p[0, :] * p[0, :], p[1, :] * p[1, :]], axis=0)  # (2, K)

    # ---- tile sizing (generation-aware, conservative) -------------------------
    # VMEM pads the lane (last) dim to a multiple of 128, so the real per-buffer
    # footprint is tile_n * round_up(K,128) * itemsize.  Keep the double-buffered
    # input around ~24 MiB total: safe under a 32 MiB scoped-VMEM limit on
    # v5e/v6e/v7x (v7x physical VMEM is 64 MiB).
    lane_padded_k = ((K + 127) // 128) * 128
    per_buffer_budget = 12 * 1024 * 1024  # bytes; x2 for double buffering
    if tile_n is None:
        tile_n = per_buffer_budget // (lane_padded_k * itemsize)
    # second-to-last block dim must be a multiple of 8 (or the full extent)
    tile_n = max(8, (int(tile_n) // 8) * 8)
    n_rounded = ((N + 7) // 8) * 8
    tile_n = min(tile_n, n_rounded)

    # v7x megacore: make sure the "parallel" grid axis has >= 2 steps when N is
    # large enough that splitting is worthwhile (each step still amortizes the
    # per-step pipeline overhead).
    steps = pl.cdiv(N, tile_n)
    if steps < 2 and N >= 1024:
        tile_n = max(8, ((pl.cdiv(N, 2) + 7) // 8) * 8)
        steps = pl.cdiv(N, tile_n)

    grid = (steps,)

    out = pl.pallas_call(
        harmonic_kernel,
        out_shape=jax.ShapeDtypeStruct((N, 1), jnp.float32),
        grid_spec=pltpu.PrefetchScalarGridSpec(
            num_scalar_prefetch=0,
            grid=grid,
            in_specs=[
                # contiguous (tile_n, K) row-slab per step, pipelined over the grid;
                # the last block may overhang N (overhang rows feed only dropped
                # output rows).
                pl.BlockSpec((tile_n, K), lambda i: (i, 0)),
                # constant (2, K) params block: same block index every step, so it
                # is DMA'd once and stays resident in VMEM.
                pl.BlockSpec((2, K), lambda i: (0, 0)),
            ],
            out_specs=pl.BlockSpec((tile_n, 1), lambda i: (i, 0)),
        ),
        compiler_params=pltpu.CompilerParams(
            # independent row-tiles: lets v7x shard steps across its 2 TensorCores
            dimension_semantics=("parallel",),
            vmem_limit_bytes=32 * 1024 * 1024,
        ),
        cost_estimate=pl.CostEstimate(
            flops=4 * N * K,
            transcendentals=0,
            bytes_accessed=N * K * itemsize + 2 * K * 4 + N * 4,
        ),
    )(in_feat, params)

    return out  # already (N, 1)


def reference_forward(in_feat, harmonic_parameters):
    k = harmonic_parameters[0, :] ** 2
    mean = harmonic_parameters[1, :] ** 2
    n = in_feat.shape[0]
    return (jnp.sum(k * (in_feat - mean) ** 2, axis=1).reshape(n, 1)) / 2.0


if __name__ == "__main__":
    # Small shapes consistent with the module: n examples, K bond features.
    N, K = 8, 16

    # Deterministic parameter init mirroring __init__:
    #   harmonic_parameters[0, :] = sqrt(k_j), harmonic_parameters[1, :] = sqrt(mean_j)
    k_consts = jnp.linspace(1.0, 4.0, K, dtype=jnp.float32)       # spring constants
    means = jnp.linspace(0.5, 2.0, K, dtype=jnp.float32)          # equilibrium values
    harmonic_parameters = jnp.stack(
        [jnp.sqrt(k_consts), jnp.sqrt(means)], axis=0)            # (2, K)

    key = jax.random.PRNGKey(0)
    in_feat = 0.5 + jax.random.uniform(key, (N, K), dtype=jnp.float32)  # bond distances

    energy = harmonic_layer_forward(in_feat, harmonic_parameters)
    jax.block_until_ready(energy)

    ref = reference_forward(in_feat, harmonic_parameters)
    assert energy.shape == (N, 1)
    assert jnp.allclose(energy, ref, rtol=1e-5, atol=1e-5), "mismatch vs reference"

    # Exercise the multi-step grid + overhanging (partial) last block path.
    N2 = 300
    key2 = jax.random.PRNGKey(0)
    in_feat2 = 0.5 + jax.random.uniform(key2, (N2, K), dtype=jnp.float32)
    energy2 = harmonic_layer_forward(in_feat2, harmonic_parameters, tile_n=128)
    jax.block_until_ready(energy2)
    ref2 = reference_forward(in_feat2, harmonic_parameters)
    assert energy2.shape == (N2, 1)
    assert jnp.allclose(energy2, ref2, rtol=1e-5, atol=1e-5), "mismatch vs reference (tiled)"

    print("KERNEL_OK")
</pallas_src>

<mosaic_0001>
module attributes {stable_mosaic.version = 11 : i64} {
  func.func @harmonic_kernel(%arg0: i32, %arg1: memref<8x16xf32, #tpu.memory_space<vmem>>, %arg2: memref<2x16xf32, #tpu.memory_space<vmem>>, %arg3: memref<8x1xf32, #tpu.memory_space<vmem>>) attributes {dimension_semantics = [#tpu.dimension_semantics<parallel>], iteration_bounds = array<i64: 1>, scalar_prefetch = 0 : i64, scratch_operands = 0 : i64, tpu.core_type = #tpu.core_type<tc>, window_params = [{transform_indices = @transform_0, window_bounds = array<i64: 8, 16>}, {pipeline_mode = #tpu.pipeline_mode<synchronous>, transform_indices = @transform_1, window_bounds = array<i64: 2, 16>}, {transform_indices = @transform_2, window_bounds = array<i64: 8, 1>}]} {
    %c0 = arith.constant 0 : index
    %c0_0 = arith.constant 0 : index
    %0 = vector.load %arg2[%c0, %c0_0] : memref<2x16xf32, #tpu.memory_space<vmem>>, vector<2x16xf32>
    %1 = vector.extract_strided_slice %0 {offsets = [0, 0], sizes = [1, 16], strides = [1, 1]} : vector<2x16xf32> to vector<1x16xf32>
    %2 = vector.extract_strided_slice %0 {offsets = [1, 0], sizes = [1, 16], strides = [1, 1]} : vector<2x16xf32> to vector<1x16xf32>
    %c0_1 = arith.constant 0 : index
    %c0_2 = arith.constant 0 : index
    %3 = vector.load %arg1[%c0_1, %c0_2] : memref<8x16xf32, #tpu.memory_space<vmem>>, vector<8x16xf32>
    %4 = vector.broadcast %2 : vector<1x16xf32> to vector<8x16xf32>
    %5 = arith.subf %3, %4 : vector<8x16xf32>
    %6 = vector.broadcast %1 : vector<1x16xf32> to vector<8x16xf32>
    %7 = arith.mulf %6, %5 : vector<8x16xf32>
    %8 = arith.mulf %7, %5 : vector<8x16xf32>
    %cst = arith.constant dense<0.000000e+00> : vector<8xf32>
    %9 = vector.multi_reduction <add>, %8, %cst [1] : vector<8x16xf32> to vector<8xf32>
    %10 = vector.shape_cast %9 : vector<8xf32> to vector<8x1xf32>
    %c0_3 = arith.constant 0 : index
    %c0_4 = arith.constant 0 : index
    %11 = vector.load %arg3[%c0_3, %c0_4] : memref<8x1xf32, #tpu.memory_space<vmem>>, vector<8x1xf32>
    tpu.vector_store %arg3[%c0_3, %c0_4], %10 {strides = array<i32>} : memref<8x1xf32, #tpu.memory_space<vmem>>, vector<8x1xf32>,
    return
  }
  func.func @transform_0(%arg0: i32) -> (i32, i32) {
    %c0_i32 = arith.constant 0 : i32
    %c0_i32_0 = arith.constant 0 : i32
    return %arg0, %c0_i32 : i32, i32
  }
  func.func @transform_1(%arg0: i32) -> (i32, i32) {
    %c0_i32 = arith.constant 0 : i32
    %c0_i32_0 = arith.constant 0 : i32
    %c0_i32_1 = arith.constant 0 : i32
    return %c0_i32, %c0_i32_0 : i32, i32
  }
  func.func @transform_2(%arg0: i32) -> (i32, i32) {
    %c0_i32 = arith.constant 0 : i32
    %c0_i32_0 = arith.constant 0 : i32
    return %arg0, %c0_i32 : i32, i32
  }
}

</mosaic_0001>

<bundles_post_ra>
// kernel: tpu_custom_call.1
= control target key start
LH: loop header
LB: loop body
LE: loop exit
PB: predicated region body
PF: predicated region fallthrough
CT: control target
= control target key end

     0   :  { %7 = vsyncpa [#allocation3], 0  ;;  %s138_s0 = inlined_call_operand.hbm [shape: f32[8,16], index: 0, kind: input, shape index: {}]   ;;  %s139_s1 = inlined_call_operand.hbm [shape: f32[2,16], index: 1, kind: input, shape index: {}]   ;;  %s140_s2 = inlined_call_operand.vmem [shape: f32[8,1], index: 2, kind: output, shape index: {}]  }
   0x1   :  { %s14_s11 = sshll.u32 %s138_s0, 4  ;;  %s15_s11 = int_to_ptr.hbm [resolvable:$true] %s14_s11 }
   0x2   :  { %8 = vsyncpa [#allocation5], 0  ;;  %s112_s12 = smov [#allocation2]   ;;  %s25_s16 = sshll.u32 %s139_s1, 4  ;;  %s26_s16 = int_to_ptr.hbm [resolvable:$true] %s25_s16 }
   0x3   :  { %s16_s13 = sshll.u32 %s112_s12, 4  ;;  %s113_s17 = smov [#allocation4]   ;;  %s17_s13 = int_to_ptr.vmem [resolvable:$true] %s16_s13 }
   0x4   :  { %19 = dma.hbm_to_vmem [thread:$0]  %s15_s11, 128, %s17_s13, [#allocation3]  }
   0x5   :  { %s27_s18 = sshll.u32 %s113_s17, 4  ;;  %s28_s18 = int_to_ptr.vmem [resolvable:$true] %s27_s18 }
   0x6   :  { %30 = dma.hbm_to_vmem [thread:$0]  %s26_s16, 32, %s28_s18, [#allocation5]  }
   0x7   :  { %108 = dma.done.wait [#allocation3], 128  }
   0x8   :  { %109 = vsyncadd [#allocation3], 4294967168 }
   0x9   :  { %110 = dma.done.wait [#allocation5], 32  }
   0xa   :  { %111 = vsyncadd [#allocation5], 4294967264  ;;  %v39_v0 = vld [vmem:[#allocation4] sm:$0x3]  ;;  %v40_v1 = vld [vmem:[#allocation2] sm:$0xff]  ;;  %vm46_vm0 = vcmask 130048  }
   0xb   :  { %v41_v2 = vperm.slane %v39_v0, 1  ;;  %v43_v3 = vperm.slane %v39_v0, 0  ;;  %vm50_vm1 = vcmask 7168  }
   0xd   :  { %v42_v4 = vsub.f32 %v40_v1, %v41_v2 }
   0xf   :  { %v44_v5 = vmul.f32 %v43_v3, %v42_v4 }
  0x11   :  { %v45_v6 = vmul.f32 %v44_v5, %v42_v4 }
  0x13   :  { %v47_v7 = vsel %vm46_vm0, %v45_v6, 0.0 }
  0x14   :  { %48 = vadd.xlane.f32.xlu0 %v47_v7 }
  0x87   :  { %v49_v8 = vpop.xlane.xlu0 %48 }
  0x88   :  { %51 = vst.msk [vmem:[%s140_s2] sm:$0xff] %vm50_vm1, %v49_v8 }
  0x89   :  { %56 = vsyncpa [#allocation3], 1 }
  0x8a   :  { %57 = vsyncpa [#allocation5], 1 }

</bundles_post_ra>
